<compile_context>
chip_gen: v6e
topology: v6e:2x2x1
jax: 0.10.0
libtpu: 0.0.40
codegen_flags: <defaults>
</compile_context>

<pallas_src>
import jax
import jax.numpy as jnp
from jax import lax
from jax.experimental import pallas as pl
from jax.experimental.pallas import tpu as pltpu


def _round_up(n, m):
    return ((n + m - 1) // m) * m


def _elementwise_bf16_ok():
    """bf16 VPU/EUP exists on v6e/v7x; keep f32 elementwise on v5e and older."""
    try:
        kind = jax.devices()[0].device_kind.lower()
    except Exception:
        return False
    return ("v6" in kind) or ("v7" in kind)


def _choose_bm(batch):
    """Pick a batch tile: multiple of 8, divides B when possible (no pad copy),
    capped at B//2 for B >= 16 so the grid has >= 2 steps (v7x megacore)."""
    candidates = (512, 256, 128, 64, 32, 16, 8)
    limit = batch // 2 if batch >= 16 else batch
    for bm in candidates:
        if bm <= limit and batch % bm == 0:
            return bm, False
    for bm in candidates:
        if bm <= batch and batch % bm == 0:
            return bm, False
    # Fallback (batch not a multiple of 8): pad the batch axis.
    # TODO(synk): handle the ragged last tile with an in-kernel masked store
    # instead of a wrapper-side jnp.pad copy.
    return min(512, _round_up(max(batch, 8), 8)), True


def _make_classifier_kernel(n_layers, input_dim, num_labels, elementwise_bf16):
    """standardize -> [tanh -> linear(bf16 MXU matmul, f32 acc)] * n_layers."""
    inv_nm1 = 1.0 / float(input_dim - 1)
    ew_dtype = jnp.bfloat16 if elementwise_bf16 else jnp.float32

    def kernel(x_ref, *refs):
        # refs = (w0, b0, w1, b1, ..., out)
        o_ref = refs[-1]
        wb = refs[:-1]

        x = x_ref[...].astype(jnp.float32)

        # embeddings -= mean(dim=-1, keepdim=True)        (f32)
        mean = jnp.mean(x, axis=-1, keepdims=True)
        xc = x - mean
        # embeddings /= std(dim=-1, keepdim=True)  (unbiased ddof=1, like torch.std)
        var = jnp.sum(xc * xc, axis=-1, keepdims=True) * inv_nm1
        h = (xc * lax.rsqrt(var)).astype(ew_dtype)  # rsqrt on EUP; bf16 on v6e/v7x

        # dropout(p=0.1) is identity at inference time.
        # TODO(synk): training-mode dropout (stateful PRNG mask) not implemented.

        for i in range(n_layers):
            w = wb[2 * i][...]                     # bf16 [in_pad_i, out_pad_i]
            b = wb[2 * i + 1][...]                 # f32  [1, out_pad_i]
            h = jnp.tanh(h)                        # bf16 on v6e/v7x, f32 on v5e
            acc = jnp.dot(h.astype(jnp.bfloat16), w,
                          preferred_element_type=jnp.float32) + b
            h = acc if i == n_layers - 1 else acc.astype(ew_dtype)

        # Only the real label columns are written (output is NOT lane-padded).
        o_ref[...] = h[:, :num_labels].astype(o_ref.dtype)

    return kernel


def _pad_params(weights, biases, input_dim):
    """Zero-pad every layer's output dim to a multiple of 128 (lane-dense MXU).

    Padding is exact: padded activation columns are 0 (+0 bias), tanh(0)=0, and
    the corresponding zero rows of the next weight contribute nothing.
    """
    padded_w, padded_b = [], []
    prev_out_pad = input_dim
    for w, b in zip(weights, biases):
        fan_in, fan_out = w.shape
        in_pad = prev_out_pad
        out_pad = _round_up(fan_out, 128)
        wp = jnp.zeros((in_pad, out_pad), dtype=jnp.bfloat16)
        wp = wp.at[:fan_in, :fan_out].set(w.astype(jnp.bfloat16))
        bp = jnp.zeros((1, out_pad), dtype=jnp.float32)
        bp = bp.at[:, :fan_out].set(b.reshape(1, -1).astype(jnp.float32))
        padded_w.append(wp)
        padded_b.append(bp)
        prev_out_pad = out_pad
    return padded_w, padded_b


def fully_connected_classifier(x, weights, biases):
    """x: [B, 1024] float; weights[i]: [in_i, out_i]; biases[i]: [1, out_i].

    Returns logits [B, num_labels] float32.
    """
    B, D = x.shape
    n_layers = len(weights)
    num_labels = weights[-1].shape[1]

    # --- pad params to lane-dense (multiples of 128 on the output axis) ---
    pw, pb = _pad_params(weights, biases, D)

    # --- batch tiling ---
    BM, need_pad = _choose_bm(B)
    if need_pad:
        B_eff = _round_up(B, BM)
        x_in = jnp.pad(x, ((0, B_eff - B), (0, 0)))  # padded rows -> NaN, sliced off
    else:
        B_eff = B
        x_in = x
    grid = (B_eff // BM,)

    in_specs = [pl.BlockSpec((BM, D), lambda i: (i, 0))]
    operands = [x_in]
    for w, b in zip(pw, pb):
        # Constant index_maps: weights/biases stay VMEM-resident across grid steps.
        in_specs.append(pl.BlockSpec(w.shape, lambda i: (0, 0)))
        in_specs.append(pl.BlockSpec(b.shape, lambda i: (0, 0)))
        operands.append(w)
        operands.append(b)

    # Unpadded, lane-masked output block: last dim == full array dim (num_labels).
    out_spec = pl.BlockSpec((BM, num_labels), lambda i: (i, 0))
    out_shape = jax.ShapeDtypeStruct((B_eff, num_labels), jnp.float32)

    kernel = _make_classifier_kernel(n_layers, D, num_labels, _elementwise_bf16_ok())

    # --- advisory cost estimate for the XLA scheduler ---
    flops = 2 * B_eff * sum(w.shape[0] * w.shape[1] for w in pw)
    transcendentals = B_eff * sum(w.shape[0] for w in pw)  # tanh before each layer
    bytes_accessed = (x_in.size * x_in.dtype.itemsize
                      + sum(w.size * 2 for w in pw)
                      + sum(b.size * 4 for b in pb)
                      + B_eff * num_labels * 4)
    cost = pl.CostEstimate(flops=flops, transcendentals=transcendentals,
                           bytes_accessed=bytes_accessed)

    # --- VMEM budget recomputed from BM:
    #     double-buffered input/output tiles + resident (single-buffer-sized)
    #     weights/biases + generous headroom for f32 intermediates of the
    #     standardize/tanh chain.  Always above v5e's 16 MiB scoped default,
    #     well under v7x's 64 MiB physical VMEM. ---
    vmem_bytes = (2 * BM * D * 4
                  + 2 * BM * num_labels * 4
                  + sum(w.size * 2 for w in pw)
                  + sum(b.size * 4 for b in pb)
                  + 4 * BM * D * 4)
    vmem_limit = int(min(max(vmem_bytes, 24 << 20), 56 << 20))

    out = pl.pallas_call(
        kernel,
        out_shape=out_shape,
        grid_spec=pl.GridSpec(
            grid=grid,
            in_specs=in_specs,
            out_specs=out_spec,
        ),
        compiler_params=pltpu.CompilerParams(
            dimension_semantics=("parallel",),
            vmem_limit_bytes=vmem_limit,
        ),
        cost_estimate=cost,
    )(*operands)

    return out[:B] if need_pad else out


def _reference(x, weights, biases):
    x = x.astype(jnp.float32)
    mean = jnp.mean(x, axis=-1, keepdims=True)
    xc = x - mean
    var = jnp.sum(xc * xc, axis=-1, keepdims=True) / (x.shape[-1] - 1)
    h = xc / jnp.sqrt(var)
    for w, b in zip(weights, biases):
        h = jnp.tanh(h)
        h = h @ w + b
    return h


if __name__ == "__main__":
    # Module config: input_dim is hard-coded to 1024; hidden_dims=[128]; num_labels=8
    INPUT_DIM = 1024
    hidden_dims = [128]
    num_labels = 8

    key = jax.random.PRNGKey(0)
    k_x, k_x2, *k_params = jax.random.split(key, 2 + 2 * (len(hidden_dims) + 1))

    dims = [INPUT_DIM] + hidden_dims + [num_labels]
    weights, biases = [], []
    for li in range(len(dims) - 1):
        fan_in, fan_out = dims[li], dims[li + 1]
        bound = 1.0 / (fan_in ** 0.5)  # matches nn.Linear default init range
        w = jax.random.uniform(k_params[2 * li], (fan_in, fan_out),
                               minval=-bound, maxval=bound, dtype=jnp.float32)
        b = jax.random.uniform(k_params[2 * li + 1], (1, fan_out),
                               minval=-bound, maxval=bound, dtype=jnp.float32)
        weights.append(w)
        biases.append(b)

    # bf16 matmul operands (+ bf16 tanh/scale on v6e/v7x), f32 accumulation
    # -> looser tolerance vs the f32 reference.
    ATOL = RTOL = 3e-2

    # Primary check: module-sized batch (single grid step).
    B = 8
    x = jax.random.normal(k_x, (B, INPUT_DIM), dtype=jnp.float32)
    logits = jax.block_until_ready(fully_connected_classifier(x, weights, biases))
    ref = _reference(x, weights, biases)
    assert logits.shape == (B, num_labels), logits.shape
    assert jnp.allclose(logits, ref, atol=ATOL, rtol=RTOL), "mismatch vs reference (B=8)"

    # Secondary check: multi-step grid (exercises the pipelined batch tiling).
    B2 = 40
    x2 = jax.random.normal(k_x2, (B2, INPUT_DIM), dtype=jnp.float32)
    logits2 = jax.block_until_ready(fully_connected_classifier(x2, weights, biases))
    ref2 = _reference(x2, weights, biases)
    assert logits2.shape == (B2, num_labels), logits2.shape
    assert jnp.allclose(logits2, ref2, atol=ATOL, rtol=RTOL), "mismatch vs reference (B=40)"

    print("KERNEL_OK")
</pallas_src>

<mosaic_0001>
module attributes {stable_mosaic.version = 11 : i64} {
  func.func @kernel(%arg0: i32, %arg1: memref<8x1024xf32, #tpu.memory_space<vmem>>, %arg2: memref<1024x128xbf16, #tpu.memory_space<vmem>>, %arg3: memref<1x128xf32, #tpu.memory_space<vmem>>, %arg4: memref<128x128xbf16, #tpu.memory_space<vmem>>, %arg5: memref<1x128xf32, #tpu.memory_space<vmem>>, %arg6: memref<8x8xf32, #tpu.memory_space<vmem>>) attributes {dimension_semantics = [#tpu.dimension_semantics<parallel>], iteration_bounds = array<i64: 1>, scalar_prefetch = 0 : i64, scratch_operands = 0 : i64, tpu.core_type = #tpu.core_type<tc>, window_params = [{transform_indices = @transform_0, window_bounds = array<i64: 8, 1024>}, {pipeline_mode = #tpu.pipeline_mode<synchronous>, transform_indices = @transform_1, window_bounds = array<i64: 1024, 128>}, {pipeline_mode = #tpu.pipeline_mode<synchronous>, transform_indices = @transform_2, window_bounds = array<i64: 1, 128>}, {pipeline_mode = #tpu.pipeline_mode<synchronous>, transform_indices = @transform_3, window_bounds = array<i64: 128, 128>}, {pipeline_mode = #tpu.pipeline_mode<synchronous>, transform_indices = @transform_4, window_bounds = array<i64: 1, 128>}, {transform_indices = @transform_5, window_bounds = array<i64: 8, 8>}]} {
    %c0 = arith.constant 0 : index
    %c0_0 = arith.constant 0 : index
    %0 = vector.load %arg1[%c0, %c0_0] : memref<8x1024xf32, #tpu.memory_space<vmem>>, vector<8x1024xf32>
    %cst = arith.constant dense<0.000000e+00> : vector<8xf32>
    %1 = vector.multi_reduction <add>, %0, %cst [1] : vector<8x1024xf32> to vector<8xf32>
    %2 = vector.shape_cast %1 : vector<8xf32> to vector<8x1xf32>
    %cst_1 = arith.constant 1.024000e+03 : f32
    %3 = vector.broadcast %cst_1 : f32 to vector<8x1xf32>
    %4 = arith.divf %2, %3 : vector<8x1xf32>
    %5 = vector.broadcast %4 : vector<8x1xf32> to vector<8x1024xf32>
    %6 = arith.subf %0, %5 : vector<8x1024xf32>
    %7 = arith.mulf %6, %6 : vector<8x1024xf32>
    %cst_2 = arith.constant dense<0.000000e+00> : vector<8xf32>
    %8 = vector.multi_reduction <add>, %7, %cst_2 [1] : vector<8x1024xf32> to vector<8xf32>
    %9 = vector.shape_cast %8 : vector<8xf32> to vector<8x1xf32>
    %cst_3 = arith.constant 9.77517105E-4 : f32
    %10 = vector.broadcast %cst_3 : f32 to vector<8x1xf32>
    %11 = arith.mulf %9, %10 : vector<8x1xf32>
    %12 = math.rsqrt %11 : vector<8x1xf32>
    %13 = vector.broadcast %12 : vector<8x1xf32> to vector<8x1024xf32>
    %14 = arith.mulf %6, %13 : vector<8x1024xf32>
    %c0_4 = arith.constant 0 : index
    %c0_5 = arith.constant 0 : index
    %15 = vector.load %arg2[%c0_4, %c0_5] : memref<1024x128xbf16, #tpu.memory_space<vmem>>, vector<1024x128xbf16>
    %c0_6 = arith.constant 0 : index
    %c0_7 = arith.constant 0 : index
    %16 = vector.load %arg3[%c0_6, %c0_7] : memref<1x128xf32, #tpu.memory_space<vmem>>, vector<1x128xf32>
    %17 = math.tanh %14 : vector<8x1024xf32>
    %18 = arith.truncf %17 : vector<8x1024xf32> to vector<8x1024xbf16>
    %cst_8 = arith.constant dense<0.000000e+00> : vector<8x128xf32>
    %19 = tpu.matmul %18, %15, %cst_8 {dimension_numbers = #tpu.dot_dimension_numbers<[1], [0], [0], [1], [0, 0, 1, 1], [], []>} : vector<8x1024xbf16>, vector<1024x128xbf16>, vector<8x128xf32> -> vector<8x128xf32>
    %20 = vector.broadcast %16 : vector<1x128xf32> to vector<8x128xf32>
    %21 = arith.addf %19, %20 : vector<8x128xf32>
    %c0_9 = arith.constant 0 : index
    %c0_10 = arith.constant 0 : index
    %22 = vector.load %arg4[%c0_9, %c0_10] : memref<128x128xbf16, #tpu.memory_space<vmem>>, vector<128x128xbf16>
    %c0_11 = arith.constant 0 : index
    %c0_12 = arith.constant 0 : index
    %23 = vector.load %arg5[%c0_11, %c0_12] : memref<1x128xf32, #tpu.memory_space<vmem>>, vector<1x128xf32>
    %24 = math.tanh %21 : vector<8x128xf32>
    %25 = arith.truncf %24 : vector<8x128xf32> to vector<8x128xbf16>
    %cst_13 = arith.constant dense<0.000000e+00> : vector<8x128xf32>
    %26 = tpu.matmul %25, %22, %cst_13 {dimension_numbers = #tpu.dot_dimension_numbers<[1], [0], [0], [1], [0, 0, 1, 1], [], []>} : vector<8x128xbf16>, vector<128x128xbf16>, vector<8x128xf32> -> vector<8x128xf32>
    %27 = vector.broadcast %23 : vector<1x128xf32> to vector<8x128xf32>
    %28 = arith.addf %26, %27 : vector<8x128xf32>
    %29 = vector.extract_strided_slice %28 {offsets = [0, 0], sizes = [8, 8], strides = [1, 1]} : vector<8x128xf32> to vector<8x8xf32>
    %c0_14 = arith.constant 0 : index
    %c0_15 = arith.constant 0 : index
    %30 = vector.load %arg6[%c0_14, %c0_15] : memref<8x8xf32, #tpu.memory_space<vmem>>, vector<8x8xf32>
    tpu.vector_store %arg6[%c0_14, %c0_15], %29 {strides = array<i32>} : memref<8x8xf32, #tpu.memory_space<vmem>>, vector<8x8xf32>,
    return
  }
  func.func @transform_0(%arg0: i32) -> (i32, i32) {
    %c0_i32 = arith.constant 0 : i32
    %c0_i32_0 = arith.constant 0 : i32
    return %arg0, %c0_i32 : i32, i32
  }
  func.func @transform_1(%arg0: i32) -> (i32, i32) {
    %c0_i32 = arith.constant 0 : i32
    %c0_i32_0 = arith.constant 0 : i32
    %c0_i32_1 = arith.constant 0 : i32
    return %c0_i32, %c0_i32_0 : i32, i32
  }
  func.func @transform_2(%arg0: i32) -> (i32, i32) {
    %c0_i32 = arith.constant 0 : i32
    %c0_i32_0 = arith.constant 0 : i32
    %c0_i32_1 = arith.constant 0 : i32
    return %c0_i32, %c0_i32_0 : i32, i32
  }
  func.func @transform_3(%arg0: i32) -> (i32, i32) {
    %c0_i32 = arith.constant 0 : i32
    %c0_i32_0 = arith.constant 0 : i32
    %c0_i32_1 = arith.constant 0 : i32
    return %c0_i32, %c0_i32_0 : i32, i32
  }
  func.func @transform_4(%arg0: i32) -> (i32, i32) {
    %c0_i32 = arith.constant 0 : i32
    %c0_i32_0 = arith.constant 0 : i32
    %c0_i32_1 = arith.constant 0 : i32
    return %c0_i32, %c0_i32_0 : i32, i32
  }
  func.func @transform_5(%arg0: i32) -> (i32, i32) {
    %c0_i32 = arith.constant 0 : i32
    %c0_i32_0 = arith.constant 0 : i32
    return %arg0, %c0_i32 : i32, i32
  }
}

</mosaic_0001>

<bundles_post_ra>
// kernel: tpu_custom_call.1
= control target key start
LH: loop header
LB: loop body
LE: loop exit
PB: predicated region body
PF: predicated region fallthrough
CT: control target
= control target key end

     0   :  { %10 = vsyncpa [#allocation3], 0  ;;  %s1414_s0 = inlined_call_operand.hbm [shape: f32[8,1024], index: 0, kind: input, shape index: {}]   ;;  %s1415_s1 = inlined_call_operand.hbm [shape: bf16[1024,128], index: 1, kind: input, shape index: {}]   ;;  %s1416_s2 = inlined_call_operand.vmem [shape: f32[1,128], index: 2, kind: input, shape index: {}]   ;;  %s1417_s3 = inlined_call_operand.hbm [shape: bf16[128,128], index: 3, kind: input, shape index: {}]   ;;  %s1418_s4 = inlined_call_operand.vmem [shape: f32[1,128], index: 4, kind: input, shape index: {}]   ;;  %s1419_s5 = inlined_call_operand.hbm [shape: f32[8,8], index: 5, kind: output, shape index: {}]  }
   0x1   :  { %11 = vsyncpa [#allocation6], 0 }
   0x2   :  { %12 = vsyncpa [#allocation4], 0  ;;  %s1318_s18 = smov [#allocation5]  }
   0x3   :  { %s28_s19 = sshll.u32 %s1318_s18, 4  ;;  %s29_s19 = int_to_ptr.vmem [resolvable:$true] %s28_s19 }
   0x4   :  { %s1240_s20 = scalar_lea.vmem %s29_s19, 8192  ;;  %p1245_p1 = scmp.lt.s32.totalorder %s29_s19, %s29_s19 }
   0x5   :  { %p1241_p0 = scmp.ne.s32.totalorder %s29_s19, %s1240_s20  ;;  %p1246_p2 = scmp.lt.s32.totalorder %s1240_s20, %s1240_s20 }
   0x7   :  { %p1247_p3 = por %p1246_p2, %p1245_p1 }
   0x9   :  { %p1248_p4 = pnand %p1247_p3, %p1241_p0 }
   0xb   :  { %1251 = shalt.err (!%p1248_p4)
}
   0xc   :  { %s1319_s21 = smov 64   ;;  %s1320_s22 = smov 4  }
   0xd   :  { %34 = dma.hbm_to_vmem [thread:$0]  %s1415_s1, 8192, %s29_s19, [#allocation6], %s1319_s21, %s1319_s21, %s1320_s22  }
   0xe   :  { %s1321_s25 = smov [#allocation2]   ;;  %s1322_s27 = smov [#allocation7]  }
   0xf   :  { %s19_s26 = sshll.u32 %s1321_s25, 4  ;;  %s42_s28 = sshll.u32 %s1322_s27, 4  ;;  %s20_s26 = int_to_ptr.vmem [resolvable:$true] %s19_s26  ;;  %s43_s28 = int_to_ptr.vmem [resolvable:$true] %s42_s28 }
  0x10   :  { %s1260_s29 = scalar_lea.vmem %s20_s26, 1024  ;;  %p1265_p6 = scmp.lt.s32.totalorder %s20_s26, %s20_s26 }
  0x11   :  { %p1261_p5 = scmp.ne.s32.totalorder %s20_s26, %s1260_s29  ;;  %p1266_p7 = scmp.lt.s32.totalorder %s1260_s29, %s1260_s29 }
  0x13   :  { %p1267_p8 = por %p1266_p7, %p1265_p6 }
  0x15   :  { %p1268_p9 = pnand %p1267_p8, %p1261_p5 }
  0x17   :  { %1271 = shalt.err (!%p1268_p9)
}
  0x18   :  { %22 = dma.hbm_to_vmem [thread:$0]  %s1414_s0, 1024, %s20_s26, [#allocation3]  }
  0x19   :  { %s1280_s7 = scalar_lea.vmem %s43_s28, 1024  ;;  %p1285_p11 = scmp.lt.s32.totalorder %s43_s28, %s43_s28 }
  0x1a   :  { %p1281_p10 = scmp.ne.s32.totalorder %s43_s28, %s1280_s7  ;;  %p1286_p12 = scmp.lt.s32.totalorder %s1280_s7, %s1280_s7 }
  0x1c   :  { %p1287_p13 = por %p1286_p12, %p1285_p11 }
  0x1e   :  { %p1288_p0 = pnand %p1287_p13, %p1281_p10 }
  0x20   :  { %1291 = shalt.err (!%p1288_p0)
}
  0x21   :  { %48 = dma.hbm_to_vmem [thread:$0]  %s1417_s3, 1024, %s43_s28, [#allocation6], %s1319_s21, %s1319_s21, %s1320_s22  }
  0x22   :  { %1312 = dma.done.wait [#allocation3], 1024  }
  0x23   :  { %1313 = vsyncadd [#allocation3], 4294966272 }
  0x24   :  { %1314 = dma.done.wait [#allocation6], 9216  }
  0x25   :  { %1315 = vsyncadd [#allocation6], 4294958080  ;;  %v61_v0 = vld [vmem:[#allocation2] sm:$0xff]  ;;  %v62_v1 = vld [vmem:[#allocation2 + $0x8] sm:$0xff]  ;;  %vm1324_vm0 = vmmov 0   ;;  %s1325_s10 = smov [#allocation8]  }
  0x26   :  { %v63_v2 = vld [vmem:[#allocation2 + $0x10] sm:$0xff]  ;;  %v69_v3 = vadd.f32 %v62_v1, %v61_v0  ;;  %v64_v4 = vld [vmem:[#allocation2 + $0x18] sm:$0xff]  ;;  %v65_v5 = vld [vmem:[#allocation2 + $0x20] sm:$0xff]  ;;  %s931_s11 = sshll.u32 %s1325_s10, 4  ;;  %vm923_vm1 = vcmask 64512   ;;  %s932_s11 = int_to_ptr.vmem [resolvable:$true] %s931_s11 }
  0x27   :  { %v66_v7 = vld [vmem:[#allocation2 + $0x28] sm:$0xff]  ;;  %v67_v9 = vld [vmem:[#allocation2 + $0x30] sm:$0xff]  ;;  %v68_v11 = vld [vmem:[#allocation2 + $0x38] sm:$0xff]  ;;  %s1292_s12 = scalar_lea.vmem %s932_s11, 128  ;;  %p1297_p2 = scmp.lt.s32.totalorder %s932_s11, %s932_s11 }
  0x28   :  { %v70_v6 = vadd.f32 %v69_v3, %v63_v2  ;;  %v1140_v40 = vld [vmem:[#allocation5 + $0x78] sm:$0xff]   ;;  %v1144_v44 = vld [vmem:[#allocation5 + $0x70] sm:$0xff]   ;;  %v1148_v48 = vld [vmem:[#allocation5 + $0x68] sm:$0xff]   ;;  %p1293_p1 = scmp.ne.s32.totalorder %s932_s11, %s1292_s12  ;;  %p1298_p3 = scmp.lt.s32.totalorder %s1292_s12, %s1292_s12 }
  0x29   :  { %v1141_v41 = vld [vmem:[#allocation5 + $0xf8] sm:$0xff]   ;;  %1015 = vmatprep.subr.bf16.mxu0 %v1140_v40  ;;  %v1145_v45 = vld [vmem:[#allocation5 + $0xf0] sm:$0xff]   ;;  %v1149_v49 = vld [vmem:[#allocation5 + $0xe8] sm:$0xff]  }
  0x2a   :  { %v71_v8 = vadd.f32 %v70_v6, %v64_v4  ;;  %v1142_v42 = vld [vmem:[#allocation5 + $0x38] sm:$0xff]   ;;  %1037 = vmatprep.subr.bf16.mxu1 %v1141_v41  ;;  %v1146_v46 = vld [vmem:[#allocation5 + $0x30] sm:$0xff]   ;;  %v1150_v50 = vld [vmem:[#allocation5 + $0x28] sm:$0xff]   ;;  %p1299_p4 = por %p1298_p3, %p1297_p2 }
  0x2b   :  { %v1143_v43 = vld [vmem:[#allocation5 + $0xb8] sm:$0xff]   ;;  %1016 = vmatpush3.bf16.msra.mxu0 %v1142_v42  ;;  %v1147_v47 = vld [vmem:[#allocation5 + $0xb0] sm:$0xff]   ;;  %v1151_v51 = vld [vmem:[#allocation5 + $0xa8] sm:$0xff]  }
  0x2c   :  { %v72_v10 = vadd.f32 %v71_v8, %v65_v5  ;;  %1038 = vmatpush3.bf16.msra.mxu1 %v1143_v43  ;;  %1017 = vmatprep.subr.bf16.mxu0 %v1144_v44  ;;  %v1152_v52 = vld [vmem:[#allocation5 + $0x60] sm:$0xff]   ;;  %v1156_v56 = vld [vmem:[#allocation5 + $0x58] sm:$0xff]   ;;  %v1160_v60 = vld [vmem:[#allocation5 + $0x50] sm:$0xff]   ;;  %p1300_p5 = pnand %p1299_p4, %p1293_p1 }
  0x2d   :  { %1039 = vmatprep.subr.bf16.mxu1 %v1145_v45  ;;  %v1153_v53 = vld [vmem:[#allocation5 + $0xe0] sm:$0xff]   ;;  %v1157_v57 = vld [vmem:[#allocation5 + $0xd8] sm:$0xff]   ;;  %v1161_v61 = vld [vmem:[#allocation5 + $0xd0] sm:$0xff]  }
  0x2e   :  { %v73_v12 = vadd.f32 %v72_v10, %v66_v7  ;;  %v1154_v54 = vld [vmem:[#allocation5 + $0x20] sm:$0xff]   ;;  %v1158_v58 = vld [vmem:[#allocation5 + $0x18] sm:$0xff]   ;;  %v1162_v62 = vld [vmem:[#allocation5 + $0x10] sm:$0xff]  }
  0x2f   :  { %1018 = vmatpush3.bf16.msra.mxu0 %v1146_v46  ;;  %v1155_v55 = vld [vmem:[#allocation5 + $0xa0] sm:$0xff]   ;;  %v1159_v59 = vld [vmem:[#allocation5 + $0x98] sm:$0xff]   ;;  %v1163_v63 = vld [vmem:[#allocation5 + $0x90] sm:$0xff]  }
  0x30   :  { %v74_v13 = vadd.f32 %v73_v12, %v67_v9  ;;  %1040 = vmatpush3.bf16.msra.mxu1 %v1147_v47  ;;  %1019 = vmatprep.subr.bf16.mxu0 %v1148_v48  ;;  %v1167_v3 = vld [vmem:[#allocation5 + $0x88] sm:$0xff]   ;;  %v1170_v6 = vld [vmem:[#allocation5] sm:$0xff]   ;;  %v1172_v8 = vld [vmem:[#allocation5 + $0x178] sm:$0xff]  }
  0x31   :  { %1041 = vmatprep.subr.bf16.mxu1 %v1149_v49  ;;  %v1181_v40 = vld [vmem:[#allocation5 + $0x1e8] sm:$0xff]   ;;  %v1184_v43 = vld [vmem:[#allocation5 + $0x160] sm:$0xff]   ;;  %v1188_v47 = vld [vmem:[#allocation5 + $0x158] sm:$0xff]  }
  0x32   :  { %v75_v14 = vadd.f32 %v74_v13, %v68_v11  ;;  %v1182_v41 = vld [vmem:[#allocation5 + $0x128] sm:$0xff]   ;;  %v1185_v44 = vld [vmem:[#allocation5 + $0x1e0] sm:$0xff]   ;;  %v1189_v49 = vld [vmem:[#allocation5 + $0x1d8] sm:$0xff]  }
  0x33   :  { %1020 = vmatpush3.bf16.msra.mxu0 %v1150_v50  ;;  %v1183_v42 = vld [vmem:[#allocation5 + $0x1a8] sm:$0xff]   ;;  %v1186_v45 = vld [vmem:[#allocation5 + $0x120] sm:$0xff]  }
  0x34   :  { %76 = vadd.xlane.f32.xlu0 %v75_v14  ;;  %1042 = vmatpush3.bf16.msra.mxu1 %v1151_v51  ;;  %v1187_v46 = vld [vmem:[#allocation5 + $0x1a0] sm:$0xff]   ;;  %v1190_v51 = vld [vmem:[#allocation5 + $0x118] sm:$0xff]  }
  0x35   :  { %1021 = vmatprep.subr.bf16.mxu0 %v1152_v52  ;;  %1043 = vmatprep.subr.bf16.mxu1 %v1153_v53  ;;  %v1191_v52 = vld [vmem:[#allocation5 + $0x198] sm:$0xff]   ;;  %v1192_v53 = vld [vmem:[#allocation5 + $0x150] sm:$0xff]  }
  0x37   :  { %1022 = vmatpush3.bf16.msra.mxu0 %v1154_v54  ;;  %v1193_v54 = vld [vmem:[#allocation5 + $0x1d0] sm:$0xff]  }
  0x38   :  { %1044 = vmatpush3.bf16.msra.mxu1 %v1155_v55  ;;  %1023 = vmatprep.subr.bf16.mxu0 %v1156_v56  ;;  %v1194_v55 = vld [vmem:[#allocation5 + $0x110] sm:$0xff]  }
  0x39   :  { %1045 = vmatprep.subr.bf16.mxu1 %v1157_v57  ;;  %v1195_v56 = vld [vmem:[#allocation5 + $0x190] sm:$0xff]   ;;  %v1197_v57 = vld [vmem:[#allocation5 + $0x1c8] sm:$0xff]  }
  0x3b   :  { %1024 = vmatpush3.bf16.msra.mxu0 %v1158_v58  ;;  %v1199_v58 = vld [vmem:[#allocation5 + $0x188] sm:$0xff]  }
  0x3c   :  { %1046 = vmatpush3.bf16.msra.mxu1 %v1159_v59  ;;  %1025 = vmatprep.subr.bf16.mxu0 %v1160_v60  ;;  %v1200_v59 = vld [vmem:[#allocation5 + $0x140] sm:$0xff]  }
  0x3d   :  { %1047 = vmatprep.subr.bf16.mxu1 %v1161_v61  ;;  %v1201_v60 = vld [vmem:[#allocation5 + $0x1c0] sm:$0xff]  }
  0x3e   :  { %v1202_v61 = vld [vmem:[#allocation5 + $0x100] sm:$0xff]  }
  0x3f   :  { %1026 = vmatpush3.bf16.msra.mxu0 %v1162_v62  ;;  %v1203_v62 = vld [vmem:[#allocation5 + $0x180] sm:$0xff]  }
  0x40   :  { %1048 = vmatpush3.bf16.msra.mxu1 %v1163_v63 }
  0xbd   :  { %v77_v15 = vpop.xlane.xlu0 %76 }
  0xbe   :  { %v79_v16 = vmul.f32 0.0009765625, %v77_v15 }
  0xc0   :  { %v1365_v17 = vsub.f32 %v61_v0, %v79_v16  ;;  %v1367_v18 = vsub.f32 %v62_v1, %v79_v16  ;;  %v1369_v19 = vsub.f32 %v63_v2, %v79_v16  ;;  %v1371_v20 = vsub.f32 %v64_v4, %v79_v16  ;;  %v1164_v0 = vld [vmem:[#allocation5 + $0x48] sm:$0xff]   ;;  %v1168_v4 = vld [vmem:[#allocation5 + $0x40] sm:$0xff]  }
  0xc1   :  { %v1377_v23 = vsub.f32 %v65_v5, %v79_v16  ;;  %v1381_v26 = vsub.f32 %v66_v7, %v79_v16  ;;  %v1385_v29 = vsub.f32 %v67_v9, %v79_v16  ;;  %v1389_v32 = vsub.f32 %v68_v11, %v79_v16  ;;  %v1165_v1 = vld [vmem:[#allocation5 + $0xc8] sm:$0xff]   ;;  %1027 = vmatprep.subr.bf16.mxu0 %v1164_v0  ;;  %v1169_v5 = vld [vmem:[#allocation5 + $0xc0] sm:$0xff]   ;;  %v1173_v9 = vld [vmem:[#allocation5 + $0x1f8] sm:$0xff]  }
  0xc2   :  { %v88_v21 = vmul.f32 %v1365_v17, %v1365_v17  ;;  %v89_v22 = vmul.f32 %v1367_v18, %v1367_v18  ;;  %v90_v24 = vmul.f32 %v1369_v19, %v1369_v19  ;;  %v91_v27 = vmul.f32 %v1371_v20, %v1371_v20  ;;  %v1166_v2 = vld [vmem:[#allocation5 + $0x8] sm:$0xff]   ;;  %1049 = vmatprep.subr.bf16.mxu1 %v1165_v1  ;;  %v1171_v7 = vld [vmem:[#allocation5 + $0x80] sm:$0xff]  }
  0xc3   :  { %v92_v30 = vmul.f32 %v1377_v23, %v1377_v23  ;;  %v93_v33 = vmul.f32 %v1381_v26, %v1381_v26  ;;  %v94_v35 = vmul.f32 %v1385_v29, %v1385_v29  ;;  %v95_v37 = vmul.f32 %v1389_v32, %v1389_v32  ;;  %1028 = vmatpush3.bf16.msra.mxu0 %v1166_v2 }
  0xc4   :  { %v96_v25 = vadd.f32 %v89_v22, %v88_v21  ;;  %1050 = vmatpush3.bf16.msra.mxu1 %v1167_v3  ;;  %1029 = vmatprep.subr.bf16.mxu0 %v1168_v4  ;;  %v1204_v3 = vld [vmem:[#allocation7 + $0x38] sm:$0xff]   ;;  %v1323_v4 = vmov 0.0  }
  0xc5   :  { %1051 = vmatprep.subr.bf16.mxu1 %v1169_v5  ;;  %v1205_v5 = vld [vmem:[#allocation7 + $0x30] sm:$0xff]  }
  0xc6   :  { %v97_v28 = vadd.f32 %v96_v25, %v90_v24 }
  0xc7   :  { %1030 = vmatpush3.bf16.msra.mxu0 %v1170_v6  ;;  %v1206_v6 = vld [vmem:[#allocation7 + $0x28] sm:$0xff]  }
  0xc8   :  { %v98_v31 = vadd.f32 %v97_v28, %v91_v27  ;;  %1052 = vmatpush3.bf16.msra.mxu1 %v1171_v7  ;;  %1059 = vmatprep.subr.bf16.mxu0 %v1172_v8  ;;  %v1207_v7 = vld [vmem:[#allocation7 + $0x20] sm:$0xff]   ;;  %v1208_v8 = vld [vmem:[#allocation7 + $0x18] sm:$0xff]  }
  0xc9   :  { %1081 = vmatprep.subr.bf16.mxu1 %v1173_v9  ;;  %v1209_v9 = vld [vmem:[#allocation7 + $0x10] sm:$0xff]  }
  0xca   :  { %v99_v34 = vadd.f32 %v98_v31, %v92_v30 }
  0xcc   :  { %v100_v36 = vadd.f32 %v99_v34, %v93_v33  ;;  %v1176_v33 = vld [vmem:[#allocation5 + $0x170] sm:$0xff]  }
  0xce   :  { %v101_v38 = vadd.f32 %v100_v36, %v94_v35  ;;  %v1177_v35 = vld [vmem:[#allocation5 + $0x1f0] sm:$0xff]  }
  0xd0   :  { %v102_v39 = vadd.f32 %v101_v38, %v95_v37  ;;  %v1178_v37 = vld [vmem:[#allocation5 + $0x130] sm:$0xff]  }
  0xd1   :  { %v1179_v38 = vld [vmem:[#allocation5 + $0x1b0] sm:$0xff]  }
  0xd2   :  { %103 = vadd.xlane.f32.xlu0 %v102_v39  ;;  %v1180_v39 = vld [vmem:[#allocation5 + $0x168] sm:$0xff]  }
 0x15b   :  { %v104_v10 = vpop.xlane.xlu0 %103 }
 0x15c   :  { %v105_v11 = vmul.f32 0.0009775171, %v104_v10  ;;  %v1210_v10 = vld [vmem:[#allocation7 + $0x8] sm:$0xff]  }
 0x15e   :  { %1212 = vrsqrt.f32 %v105_v11  ;;  %v1211_v11 = vld [vmem:[#allocation7] sm:$0xff]  }
 0x16b   :  { %v1213_v12 = vpop.eup %1212 }
 0x16c   :  { %v108_v13 = vmul.f32 %v1213_v12, %v1367_v18  ;;  %v110_v14 = vmul.f32 %v1213_v12, %v1371_v20  ;;  %v107_v15 = vmul.f32 %v1213_v12, %v1365_v17  ;;  %v109_v16 = vmul.f32 %v1213_v12, %v1369_v19  ;;  %v1174_v20 = vld [vmem:[#allocation5 + $0x138] sm:$0xff]  }
 0x16d   :  { %v112_v21 = vmul.f32 %v1213_v12, %v1381_v26  ;;  %v114_v22 = vmul.f32 %v1213_v12, %v1389_v32  ;;  %v1175_v19 = vld [vmem:[#allocation5 + $0x1b8] sm:$0xff]   ;;  %v111_v48 = vmul.f32 %v1213_v12, %v1377_v23  ;;  %v113_v50 = vmul.f32 %v1213_v12, %v1385_v29  ;;  %v1196_v23 = vld [vmem:[#allocation5 + $0x148] sm:$0xff]  }
 0x16e   :  { %1214 = vtanh.f32 %v108_v13  ;;  %v1198_v29 = vld [vmem:[#allocation5 + $0x108] sm:$0xff]  }
 0x16f   :  { %1216 = vtanh.f32 %v110_v14 }
 0x170   :  { %1218 = vtanh.f32 %v107_v15 }
 0x171   :  { %1220 = vtanh.f32 %v109_v16 }
 0x172   :  { %1222 = vtanh.f32 %v112_v21 }
 0x173   :  { %1224 = vtanh.f32 %v114_v22 }
 0x174   :  { %1226 = vtanh.f32 %v111_v48 }
 0x175   :  { %1228 = vtanh.f32 %v113_v50 }
 0x17b   :  { %v1215_v24 = vpop.eup %1214 }
 0x17c   :  { %v1217_v25 = vpop.eup %1216  ;;  %v253_v27 = vpack.c.bf16 %v1215_v24, %v1215_v24 }
 0x17d   :  { %v1219_v18 = vpop.eup %1218  ;;  %v255_v28 = vpack.c.bf16 %v1217_v25, %v1217_v25 }
 0x17e   :  { %v1221_v30 = vpop.eup %1220  ;;  %682 = vmatprep.mubr.bf16.mxu0 %v253_v27  ;;  %v252_v17 = vpack.c.bf16 %v1219_v18, %v1219_v18  ;;  %v941_v27 = vld [vmem:[%s1416_s2] ss:$0 sm:$0xff] }
 0x17f   :  { %v1223_v31 = vpop.eup %1222  ;;  %722 = vmatprep.mubr.bf16.mxu1 %v255_v28  ;;  %v254_v26 = vpack.c.bf16 %v1221_v30, %v1221_v30 }
 0x180   :  { %v1225_v34 = vpop.eup %1224  ;;  %683 = vmatmul.mubr.bf16.vlgmr.msra.gmra.mxu0 %v252_v17  ;;  %v257_v32 = vpack.c.bf16 %v1223_v31, %v1223_v31 }
 0x181   :  { %723 = vmatmul.mubr.bf16.vlgmr.msra.gmra.mxu1 %v254_v26  ;;  %1060 = vmatpush3.bf16.msra.mxu0 %v1174_v20  ;;  %v259_v36 = vpack.c.bf16 %v1225_v34, %v1225_v34  ;;  %v1227_v63 = vpop.eup %1226 }
 0x182   :  { %1082 = vmatpush3.bf16.msra.mxu1 %v1175_v19  ;;  %762 = vmatprep.mubr.bf16.mxu0 %v257_v32  ;;  %v1229_v0 = vpop.eup %1228  ;;  %v256_v1 = vpack.c.bf16 %v1227_v63, %v1227_v63 }
 0x183   :  { %802 = vmatprep.mubr.bf16.mxu1 %v259_v36  ;;  %1061 = vmatprep.subr.bf16.mxu0 %v1176_v33  ;;  %v258_v2 = vpack.c.bf16 %v1229_v0, %v1229_v0 }
 0x184   :  { %1083 = vmatprep.subr.bf16.mxu1 %v1177_v35 }
 0x185   :  { %1062 = vmatpush3.bf16.msra.mxu0 %v1178_v37 }
 0x186   :  { %1084 = vmatpush3.bf16.msra.mxu1 %v1179_v38  ;;  %1063 = vmatprep.subr.bf16.mxu0 %v1180_v39 }
 0x187   :  { %1085 = vmatprep.subr.bf16.mxu1 %v1181_v40 }
 0x189   :  { %1064 = vmatpush3.bf16.msra.mxu0 %v1182_v41  ;;  %v1006_v41 = vld [vmem:[%s1418_s4] ss:$0 sm:$0xff] }
 0x18a   :  { %1086 = vmatpush3.bf16.msra.mxu1 %v1183_v42  ;;  %1065 = vmatprep.subr.bf16.mxu0 %v1184_v43 }
 0x18b   :  { %1087 = vmatprep.subr.bf16.mxu1 %v1185_v44 }
 0x18d   :  { %1066 = vmatpush3.bf16.msra.mxu0 %v1186_v45 }
 0x18e   :  { %1088 = vmatpush3.bf16.msra.mxu1 %v1187_v46  ;;  %1067 = vmatprep.subr.bf16.mxu0 %v1188_v47 }
 0x18f   :  { %1089 = vmatprep.subr.bf16.mxu1 %v1189_v49 }
 0x191   :  { %1068 = vmatpush3.bf16.msra.mxu0 %v1190_v51 }
 0x192   :  { %1090 = vmatpush3.bf16.msra.mxu1 %v1191_v52  ;;  %1069 = vmatprep.subr.bf16.mxu0 %v1192_v53 }
 0x193   :  { %1091 = vmatprep.subr.bf16.mxu1 %v1193_v54 }
 0x195   :  { %1070 = vmatpush3.bf16.msra.mxu0 %v1194_v55 }
 0x196   :  { %1092 = vmatpush3.bf16.msra.mxu1 %v1195_v56  ;;  %1071 = vmatprep.subr.bf16.mxu0 %v1196_v23 }
 0x197   :  { %1093 = vmatprep.subr.bf16.mxu1 %v1197_v57 }
 0x199   :  { %1072 = vmatpush3.bf16.msra.mxu0 %v1198_v29 }
 0x19a   :  { %1094 = vmatpush3.bf16.msra.mxu1 %v1199_v58  ;;  %1073 = vmatprep.subr.bf16.mxu0 %v1200_v59 }
 0x19b   :  { %1095 = vmatprep.subr.bf16.mxu1 %v1201_v60 }
 0x19d   :  { %1074 = vmatpush3.bf16.msra.mxu0 %v1202_v61 }
 0x19e   :  { %1096 = vmatpush3.bf16.msra.mxu1 %v1203_v62  ;;  %1112 = vmatprep.subr.bf16.mxu0 %v1323_v4 }
 0x1a0   :  { %763 = vmatmul.mubr.bf16.vlgmr.msra.gmra.mxu0 %v256_v1 }
 0x1a1   :  { %803 = vmatmul.mubr.bf16.vlgmr.msra.gmra.mxu1 %v258_v2  ;;  %1113 = vmatpush3.bf16.msra.mxu0 %v1204_v3 }
 0x1a2   :  { %1114 = vmatprep.subr.bf16.mxu0 %v1323_v4  ;;  %1128 = vmatprep.mubr.msk.bf16.mxu0 %vm1324_vm0, %v1323_v4 }
 0x1a5   :  { %1115 = vmatpush3.bf16.msra.mxu0 %v1205_v5 }
 0x1a6   :  { %1116 = vmatprep.subr.bf16.mxu0 %v1323_v4 }
 0x1a9   :  { %1117 = vmatpush3.bf16.msra.mxu0 %v1206_v6 }
 0x1aa   :  { %1118 = vmatprep.subr.bf16.mxu0 %v1323_v4 }
 0x1ad   :  { %1119 = vmatpush3.bf16.msra.mxu0 %v1207_v7 }
 0x1ae   :  { %1120 = vmatprep.subr.bf16.mxu0 %v1323_v4 }
 0x1b1   :  { %1121 = vmatpush3.bf16.msra.mxu0 %v1208_v8 }
 0x1b2   :  { %1122 = vmatprep.subr.bf16.mxu0 %v1323_v4 }
 0x1b5   :  { %1123 = vmatpush3.bf16.msra.mxu0 %v1209_v9 }
 0x1b6   :  { %1124 = vmatprep.subr.bf16.mxu0 %v1323_v4 }
 0x1b9   :  { %1125 = vmatpush3.bf16.msra.mxu0 %v1210_v10 }
 0x1ba   :  { %1126 = vmatprep.subr.bf16.mxu0 %v1323_v4 }
 0x1bd   :  { %1127 = vmatpush3.bf16.msra.mxu0 %v1211_v11 }
 0x240   :  { %v1031_v12 = vpop.f32.mrf.mxu0 }
 0x241   :  { %v1053_v13 = vpop.f32.mrf.mxu1 }
 0x242   :  { %v1032_v14 = vpop.f32.mrf.mxu0 }
 0x243   :  { %v1054_v15 = vpop.f32.mrf.mxu1  ;;  %v1033_v25 = vadd.f32 %v1032_v14, %v1031_v12 }
 0x244   :  { %v1034_v16 = vpop.f32.mrf.mxu0  ;;  %v1055_v20 = vadd.f32 %v1054_v15, %v1053_v13 }
 0x245   :  { %v1056_v21 = vpop.f32.mrf.mxu1  ;;  %v685_v18 = vadd.f32 %v1033_v25, %v941_v27 }
 0x246   :  { %v1035_v22 = vpop.f32.mrf.mxu0 }
 0x247   :  { %v1057_v24 = vpop.f32.mrf.mxu1  ;;  %v725_v19 = vadd.f32 %v1055_v20, %v685_v18 }
 0x260   :  { %v1075_v28 = vpop.f32.mrf.mxu0 }
 0x261   :  { %v1097_v30 = vpop.f32.mrf.mxu1 }
 0x262   :  { %v1076_v17 = vpop.f32.mrf.mxu0 }
 0x263   :  { %v1077_v31 = vadd.f32 %v1076_v17, %v1075_v28  ;;  %v1098_v26 = vpop.f32.mrf.mxu1 }
 0x264   :  { %v1078_v33 = vpop.f32.mrf.mxu0  ;;  %v1099_v32 = vadd.f32 %v1098_v26, %v1097_v30 }
 0x265   :  { %v765_v34 = vadd.f32 %v1077_v31, %v725_v19  ;;  %v1100_v35 = vpop.f32.mrf.mxu1 }
 0x266   :  { %v1079_v36 = vpop.f32.mrf.mxu0 }
 0x267   :  { %v805_v37 = vadd.f32 %v1099_v32, %v765_v34  ;;  %v1101_v38 = vpop.f32.mrf.mxu1 }
 0x269   :  { %1230 = vtanh.f32 %v805_v37 }
 0x276   :  { %v1231_v39 = vpop.eup %1230 }
 0x277   :  { %v828_v40 = vpack.c.bf16 %v1231_v39, %v1231_v39 }
 0x279   :  { %1129 = vmatmul.mubr.bf16.vlgmr.msra.gmra.mxu0 %v828_v40 }
 0x339   :  { %v917_v42 = vpop.f32.mrf.mxu0 }
 0x33a   :  { %v918_v43 = vadd.f32 %v1006_v41, %v917_v42 }
 0x33b   :  { %v1130_v44 = vpop.f32.mrf.mxu0 }
 0x33c   :  { %924 = vst.msk [vmem:[#allocation8] sm:$0xff] %vm923_vm1, %v918_v43 }
 0x33d   :  { %v920_v45 = vpop.f32.mrf.mxu0 }
 0x33e   :  { %1303 = shalt.err (!%p1300_p5)
}
 0x33f   :  { %934 = dma.vmem_to_hbm [thread:$0]  %s932_s11, 128, %s1419_s5, [#allocation4]   ;;  %v1131_v46 = vpop.f32.mrf.mxu0 }
 0x340   :  { %1316 = dma.done.wait [#allocation4], 128  }
 0x341   :  { %1317 = vsyncadd [#allocation4], 4294967168 }
 0x342   :  { %938 = vsyncpa [#allocation3], 1 }
 0x343   :  { %939 = vsyncpa [#allocation6], 1 }
 0x344   :  { %940 = vsyncpa [#allocation4], 1 }

</bundles_post_ra>
